<compile_context>
chip_gen: v5e
topology: v5e:2x2
jax: 0.10.0
libtpu: 0.0.40
codegen_flags: <defaults>
</compile_context>

<pallas_src>
import jax
import jax.numpy as jnp
from jax.experimental import pallas as pl
from jax.experimental.pallas import tpu as pltpu


_SUBLANE = 8   # f32 sublane granularity for row tiles


def _round_up(n, m):
    return ((n + m - 1) // m) * m


def _mysequential_kernel(x_ref, w1_ref, b1_ref, w2_ref, b2_ref, o_ref):
    # Linear 1: (tm, IN) @ (IN, HID), f32 accumulation (Mosaic pads small K).
    x = x_ref[...].astype(w1_ref.dtype)                # MXU operand dtype
    h = jnp.dot(x, w1_ref[...], preferred_element_type=jnp.float32)
    h = h + b1_ref[...].astype(jnp.float32)            # elementwise stays f32
    # ReLU on the VPU (f32).
    h = jnp.maximum(h, 0.0)
    # Linear 2: (tm, HID) @ (HID, OUT), f32 accumulation.
    y = jnp.dot(h.astype(w2_ref.dtype), w2_ref[...],
                preferred_element_type=jnp.float32)
    y = y + b2_ref[...].astype(jnp.float32)
    # Store at the true output width (masked vst; far cheaper than a padded
    # 128-lane slab + post-slice at OUT=10).
    o_ref[...] = y.astype(o_ref.dtype)


def mysequential_forward(x, w1, b1, w2, b2, *, tile_m=512, mxu_dtype=None):
    """Fused Linear -> ReLU -> Linear (the MySequential forward).

    x: (B, IN), w1: (IN, HID), b1: (1, HID), w2: (HID, OUT), b2: (1, OUT).
    Only the batch dim is padded (to a whole number of sublane-aligned row
    tiles); feature dims are kept at their true widths.  `mxu_dtype` (e.g.
    jnp.bfloat16) optionally narrows the matmul operands while keeping f32
    accumulation and f32 elementwise math.
    """
    B, IN = x.shape
    HID = w1.shape[1]
    OUT = w2.shape[1]
    dtype = x.dtype

    # ---- Row-tile selection -------------------------------------------------
    B_align = _round_up(B, _SUBLANE)
    tm = min(_round_up(tile_m, _SUBLANE), B_align)
    # Ensure >= 2 tiles when the batch permits so both v7x TensorCores are fed.
    half = _round_up(pl.cdiv(B_align, 2), _SUBLANE)
    if B_align >= 2 * _SUBLANE and tm > half:
        tm = half
    tm = _round_up(tm, _SUBLANE)
    n_tiles = pl.cdiv(B_align, tm)
    B_pad = n_tiles * tm

    # ---- Minimal batch-row padding (feature dims untouched) -----------------
    if B_pad != B:
        xp = jnp.zeros((B_pad, IN), dtype).at[:B, :].set(x)
    else:
        xp = x

    # Optional narrow MXU-operand path (weights cast once, outside the kernel;
    # the activation tile is cast inside via .astype(w_ref.dtype)).
    if mxu_dtype is not None:
        w1_in = w1.astype(mxu_dtype)
        w2_in = w2.astype(mxu_dtype)
    else:
        w1_in, w2_in = w1, w2

    # ---- Cost estimate from true (unpadded) dims ----------------------------
    itemsize = jnp.dtype(dtype).itemsize
    flops = 2 * B * (IN * HID + HID * OUT)
    bytes_accessed = itemsize * (B * IN + IN * HID + HID
                                 + HID * OUT + OUT + B * OUT)

    out = pl.pallas_call(
        _mysequential_kernel,
        out_shape=jax.ShapeDtypeStruct((B_pad, OUT), dtype),
        grid_spec=pltpu.PrefetchScalarGridSpec(
            num_scalar_prefetch=0,
            grid=(n_tiles,),
            in_specs=[
                # Activations: one row tile per grid step, true lane width IN.
                pl.BlockSpec((tm, IN), lambda i: (i, 0)),
                # Weights / biases: constant block index -> DMA'd once,
                # VMEM-resident across all row tiles.
                pl.BlockSpec((IN, HID), lambda i: (0, 0)),
                pl.BlockSpec((1, HID), lambda i: (0, 0)),
                pl.BlockSpec((HID, OUT), lambda i: (0, 0)),
                pl.BlockSpec((1, OUT), lambda i: (0, 0)),
            ],
            out_specs=pl.BlockSpec((tm, OUT), lambda i: (i, 0)),
        ),
        compiler_params=pltpu.CompilerParams(
            dimension_semantics=("parallel",)),   # shards row tiles on v7x 2-TC
        cost_estimate=pl.CostEstimate(
            flops=flops, transcendentals=0, bytes_accessed=bytes_accessed),
    )(xp, w1_in, b1, w2_in, b2)

    return out[:B, :] if B_pad != B else out


def init_params(key, in_dim, hid_dim, out_dim, dtype=jnp.float32):
    """Deterministic nn.Linear-style init: U(-1/sqrt(fan_in), 1/sqrt(fan_in))."""
    k1, k2, k3, k4 = jax.random.split(key, 4)
    s1 = 1.0 / jnp.sqrt(in_dim)
    s2 = 1.0 / jnp.sqrt(hid_dim)
    w1 = jax.random.uniform(k1, (in_dim, hid_dim), dtype, -s1, s1)
    b1 = jax.random.uniform(k2, (1, hid_dim), dtype, -s1, s1)
    w2 = jax.random.uniform(k3, (hid_dim, out_dim), dtype, -s2, s2)
    b2 = jax.random.uniform(k4, (1, out_dim), dtype, -s2, s2)
    return w1, b1, w2, b2


if __name__ == "__main__":
    BATCH, IN, HID, OUT = 10, 10, 32, 10   # matches X = torch.rand((10, 10))

    key = jax.random.PRNGKey(0)
    kx, kp = jax.random.split(key)
    x = jax.random.uniform(kx, (BATCH, IN), jnp.float32)
    w1, b1, w2, b2 = init_params(kp, IN, HID, OUT)

    out = mysequential_forward(x, w1, b1, w2, b2)
    jax.block_until_ready(out)

    # Pure-JAX reference of the same sequential chain.
    ref = jnp.maximum(x @ w1 + b1, 0.0) @ w2 + b2
    assert out.shape == (BATCH, OUT)
    assert jnp.allclose(out, ref, atol=1e-5, rtol=1e-5)

    print("KERNEL_OK")
</pallas_src>

<mosaic_0001>
module attributes {stable_mosaic.version = 11 : i64} {
  func.func @_mysequential_kernel(%arg0: i32, %arg1: memref<8x10xf32, #tpu.memory_space<vmem>>, %arg2: memref<10x32xf32, #tpu.memory_space<vmem>>, %arg3: memref<1x32xf32, #tpu.memory_space<vmem>>, %arg4: memref<32x10xf32, #tpu.memory_space<vmem>>, %arg5: memref<1x10xf32, #tpu.memory_space<vmem>>, %arg6: memref<8x10xf32, #tpu.memory_space<vmem>>) attributes {dimension_semantics = [#tpu.dimension_semantics<parallel>], iteration_bounds = array<i64: 2>, scalar_prefetch = 0 : i64, scratch_operands = 0 : i64, tpu.core_type = #tpu.core_type<tc>, window_params = [{transform_indices = @transform_0, window_bounds = array<i64: 8, 10>}, {pipeline_mode = #tpu.pipeline_mode<synchronous>, transform_indices = @transform_1, window_bounds = array<i64: 10, 32>}, {pipeline_mode = #tpu.pipeline_mode<synchronous>, transform_indices = @transform_2, window_bounds = array<i64: 1, 32>}, {pipeline_mode = #tpu.pipeline_mode<synchronous>, transform_indices = @transform_3, window_bounds = array<i64: 32, 10>}, {pipeline_mode = #tpu.pipeline_mode<synchronous>, transform_indices = @transform_4, window_bounds = array<i64: 1, 10>}, {transform_indices = @transform_5, window_bounds = array<i64: 8, 10>}]} {
    %c0 = arith.constant 0 : index
    %c0_0 = arith.constant 0 : index
    %0 = vector.load %arg1[%c0, %c0_0] : memref<8x10xf32, #tpu.memory_space<vmem>>, vector<8x10xf32>
    %c0_1 = arith.constant 0 : index
    %c0_2 = arith.constant 0 : index
    %1 = vector.load %arg2[%c0_1, %c0_2] : memref<10x32xf32, #tpu.memory_space<vmem>>, vector<10x32xf32>
    %cst = arith.constant dense<0.000000e+00> : vector<8x32xf32>
    %2 = tpu.matmul %0, %1, %cst {dimension_numbers = #tpu.dot_dimension_numbers<[1], [0], [0], [1], [0, 0, 1, 1], [], []>} : vector<8x10xf32>, vector<10x32xf32>, vector<8x32xf32> -> vector<8x32xf32>
    %c0_3 = arith.constant 0 : index
    %c0_4 = arith.constant 0 : index
    %3 = vector.load %arg3[%c0_3, %c0_4] : memref<1x32xf32, #tpu.memory_space<vmem>>, vector<1x32xf32>
    %4 = vector.broadcast %3 : vector<1x32xf32> to vector<8x32xf32>
    %5 = arith.addf %2, %4 : vector<8x32xf32>
    %cst_5 = arith.constant 0.000000e+00 : f32
    %6 = vector.broadcast %cst_5 : f32 to vector<8x32xf32>
    %7 = arith.maximumf %5, %6 : vector<8x32xf32>
    %c0_6 = arith.constant 0 : index
    %c0_7 = arith.constant 0 : index
    %8 = vector.load %arg4[%c0_6, %c0_7] : memref<32x10xf32, #tpu.memory_space<vmem>>, vector<32x10xf32>
    %cst_8 = arith.constant dense<0.000000e+00> : vector<8x10xf32>
    %9 = tpu.matmul %7, %8, %cst_8 {dimension_numbers = #tpu.dot_dimension_numbers<[1], [0], [0], [1], [0, 0, 1, 1], [], []>} : vector<8x32xf32>, vector<32x10xf32>, vector<8x10xf32> -> vector<8x10xf32>
    %c0_9 = arith.constant 0 : index
    %c0_10 = arith.constant 0 : index
    %10 = vector.load %arg5[%c0_9, %c0_10] : memref<1x10xf32, #tpu.memory_space<vmem>>, vector<1x10xf32>
    %11 = vector.broadcast %10 : vector<1x10xf32> to vector<8x10xf32>
    %12 = arith.addf %9, %11 : vector<8x10xf32>
    %c0_11 = arith.constant 0 : index
    %c0_12 = arith.constant 0 : index
    %13 = vector.load %arg6[%c0_11, %c0_12] : memref<8x10xf32, #tpu.memory_space<vmem>>, vector<8x10xf32>
    tpu.vector_store %arg6[%c0_11, %c0_12], %12 {strides = array<i32>} : memref<8x10xf32, #tpu.memory_space<vmem>>, vector<8x10xf32>,
    return
  }
  func.func @transform_0(%arg0: i32) -> (i32, i32) {
    %c0_i32 = arith.constant 0 : i32
    %c0_i32_0 = arith.constant 0 : i32
    return %arg0, %c0_i32 : i32, i32
  }
  func.func @transform_1(%arg0: i32) -> (i32, i32) {
    %c0_i32 = arith.constant 0 : i32
    %c0_i32_0 = arith.constant 0 : i32
    %c0_i32_1 = arith.constant 0 : i32
    return %c0_i32, %c0_i32_0 : i32, i32
  }
  func.func @transform_2(%arg0: i32) -> (i32, i32) {
    %c0_i32 = arith.constant 0 : i32
    %c0_i32_0 = arith.constant 0 : i32
    %c0_i32_1 = arith.constant 0 : i32
    return %c0_i32, %c0_i32_0 : i32, i32
  }
  func.func @transform_3(%arg0: i32) -> (i32, i32) {
    %c0_i32 = arith.constant 0 : i32
    %c0_i32_0 = arith.constant 0 : i32
    %c0_i32_1 = arith.constant 0 : i32
    return %c0_i32, %c0_i32_0 : i32, i32
  }
  func.func @transform_4(%arg0: i32) -> (i32, i32) {
    %c0_i32 = arith.constant 0 : i32
    %c0_i32_0 = arith.constant 0 : i32
    %c0_i32_1 = arith.constant 0 : i32
    return %c0_i32, %c0_i32_0 : i32, i32
  }
  func.func @transform_5(%arg0: i32) -> (i32, i32) {
    %c0_i32 = arith.constant 0 : i32
    %c0_i32_0 = arith.constant 0 : i32
    return %arg0, %c0_i32 : i32, i32
  }
}

</mosaic_0001>

<bundles_post_ra>
// kernel: tpu_custom_call.1
= control target key start
LH: loop header
LB: loop body
LE: loop exit
PB: predicated region body
PF: predicated region fallthrough
CT: control target
= control target key end

     0   :  { %10 = vsyncpa [#allocation3], 0  ;;  %s623_s0 = inlined_call_operand.vmem [shape: f32[16,10], index: 0, kind: input, shape index: {}]   ;;  %s624_s1 = inlined_call_operand.vmem [shape: f32[10,32], index: 1, kind: input, shape index: {}]   ;;  %s625_s2 = inlined_call_operand.vmem [shape: f32[1,32], index: 2, kind: input, shape index: {}]   ;;  %s626_s3 = inlined_call_operand.vmem [shape: f32[32,10], index: 3, kind: input, shape index: {}]   ;;  %s627_s4 = inlined_call_operand.vmem [shape: f32[1,10], index: 4, kind: input, shape index: {}]   ;;  %s628_s5 = inlined_call_operand.hbm [shape: f32[16,10], index: 5, kind: output, shape index: {}]  }
   0x1   :  { %12 = vsyncpa [#allocation3 + $0x1], 0  ;;  %s512_s18 = smov 0   ;;  %s514_s19 = smov 0  }
   0x2   :  { %s516_s20 = smov 0   ;;  %s518_s21 = smov 0  }
   0x3 LB: > { %s533_s22 = sadd.s32 4294967295, %s480_s21   ;;  %s364_s23 = sadd.s32 4294967294, %s480_s21   ;;  %s480_s21 = sphi %s518_s21, %s634_s21   ;;  %s476_s20 = sphi %s516_s20, %s633_s20   ;;  %s472_s19 = sphi %s514_s19, %s632_s19   ;;  %s468_s18 = sphi %s512_s18, %s631_s18  }
   0x4   : > { %s537_s24 = sadd.s32 1, %s480_s21   ;;  %s135_s25 = sadd.s32 1, %s476_s20 }
   0x5   : > { %s132_s26 = ssub.s32 %s480_s21, %s537_s24  ;;  %p145_p0 = scmp.ne.s32.totalorder %s476_s20, %s472_s19 }
   0x6   : > { %p133_p1 = scmp.eq.s32.totalorder %s132_s26, 0  ;;  %p146_p2 = scmp.eq.s32.totalorder %s533_s22, 1 }
   0x7   : > { %p151_p3 = scmp.ne.s32.totalorder %s472_s19, %s468_s18  ;;  %p152_p4 = scmp.eq.s32.totalorder %s364_s23, 1 }
   0x8   : > { %s548_s27 = scalar_select %p133_p1, %s476_s20, %s135_s25  }
   0x9   : > { %p550_p5 = por %p146_p2, %p145_p0  ;;  %p554_p6 = por %p152_p4, %p151_p3 }
   0xa   : > { %p367_p7 = scmp.ge.s32.totalorder %s480_s21, 1  ;;  %p189_p8 = scmp.lt.s32.totalorder %s480_s21, 3 }
   0xc   : > { %p190_p9 = pnand %p367_p7, %p189_p8 }
   0xd   : > { %p216_p10 = scmp.lt.s32.totalorder (!%p190_p9), %s533_s22, 1  ;;  %s213_s8 = sand.u32 (!%p190_p9), 1, %s472_s19  }
   0xe   : > { %193 = sbr.rel (%p190_p9) target bundleno = 285 (0x11d), region = 40  ;;  %s368_s9 = sshll.u32 (!%p190_p9), %s213_s8, 3 }
   0xf   : > { %s374_s10 = sshll.u32 (!%p190_p9), %s533_s22, 3  ;;  %s215_s16 = scalar_lea.vmem (!%p190_p9), [#allocation2], %s368_s9 }
  0x10   : > { %s300_s13 = scalar_lea.hbm (!%p190_p9), %s628_s5, %s374_s10  ;;  %s302_s17 = sshll.u32 (!%p190_p9), %s215_s16, 4  ;;  %s303_s17 = int_to_ptr.vmem [resolvable:$true] %s302_s17 }
  0x11   : > { %s304_s23 = sshll.u32 (!%p190_p9), %s300_s13, 4  ;;  %s290_s25 = scalar_lea.sflag (!%p190_p9), [#allocation3], %s213_s8  ;;  %s305_s23 = int_to_ptr.hbm [resolvable:$true] %s304_s23 }
  0x12   : > { %s438_s7 = scalar_lea.hbm (!%p190_p9), %s628_s5, 16 }
  0x13   : > { %v222_v0 = vld [vmem:[%s624_s1 + $0x8] sm:$0x3]  ;;  %vm231_vm0 = vcmask 1041408   ;;  %v221_v1 = vld [vmem:[%s624_s1] sm:$0xff]  ;;  %v259_v2 = vld [vmem:[%s626_s3 + $0x18] sm:$0xff]  ;;  %s217_s11 = scalar_select %p216_p10, %s533_s22, 1 }
  0x14   : > { %370 = vmatpush.msk.msra.mxu0 %vm231_vm0, %v222_v0  ;;  %280 = vmatpush.msra.mxu1 %v259_v2  ;;  %vm227_vm1 = vcmask 80896   ;;  %v258_v4 = vld [vmem:[%s626_s3 + $0x10] sm:$0xff]  ;;  %v257_v5 = vld [vmem:[%s626_s3 + $0x8] sm:$0xff]  ;;  %v256_v6 = vld [vmem:[%s626_s3] sm:$0xff]  ;;  %vm264_vm2 = vcmask 261120   ;;  %s432_s22 = sshra.s32 %s305_s23, 4  ;;  %s433_s22 = int_to_ptr.hbm [resolvable:$true] %s432_s22 }
  0x15   : > { %s369_s12 = sshll.u32 %s217_s11, 3  ;;  %v416_v7 = vld [vmem:[%s625_s2] ss:$0 sm:$0xff]  ;;  %s434_s26 = scalar_lea.hbm %s433_s22, 8 }
  0x16   : > { %250 = vmatpush.msra.mxu0 %v221_v1  ;;  %s219_s15 = scalar_lea.vmem %s623_s0, %s369_s12  ;;  %281 = vmatpush.msra.mxu1 %v258_v4  ;;  %v417_v11 = vld [vmem:[%s627_s4] ss:$0 sm:$0xff]  ;;  %p435_p11 = scmp.ne.s32.totalorder %s433_s22, %s434_s26 }
  0x17   : > { %v220_v3 = vld [vmem:[%s219_s15] sm:$0xff]  ;;  %p439_p0 = scmp.lt.s32.totalorder %s433_s22, %s628_s5  ;;  %p440_p1 = scmp.lt.s32.totalorder %s438_s7, %s434_s26 }
  0x18   : > { %371 = vmatmul.msk.f32.vlgmr.msra.gmra.mxu0 %vm227_vm1, %v220_v3  ;;  %282 = vmatpush.msra.mxu1 %v257_v5  ;;  %p436_p12 = pnand %p435_p11, %p550_p5 }
  0x19   : > { %p441_p2 = por %p440_p1, %p439_p0 }
  0x1a   : > { %283 = vmatpush.msra.mxu1 %v256_v6  ;;  %p437_p13 = pneg %p436_p12 }
  0x1c   : > { %p442_p3 = pnand %p441_p2, %p437_p13 }
  0x95   : > { %v252_v8 = vpop.f32.mrf.mxu0 }
  0x96   : > { %v253_v9 = vadd.f32 %v416_v7, %v252_v8 }
  0x98   : > { %v255_v10 = vmax.f32 %v253_v9, 0.0 }
  0x9a   : > { %372 = vmatmul.msk.f32.vlgmr.msra.gmra.mxu1 %vm264_vm2, %v255_v10 }
 0x117   : > { %v285_v12 = vpop.f32.mrf.mxu1 }
 0x118   : > { %v286_v13 = vadd.f32 %v417_v11, %v285_v12 }
 0x11a   : > { %288 = vst.msk [vmem:[%s215_s16] sm:$0xff] %vm227_vm1, %v286_v13 }
 0x11b   : > { %445 = shalt.err (!%p442_p3)
}
 0x11c   : > { %377 = dma.vmem_to_hbm [thread:$0]  (%p550_p5), %s303_s17, 128, %s305_s23, %s290_s25  }
 0x11d PF: > { %p383_p4 = scmp.ge.s32.totalorder %s480_s21, 2  ;;  %s316_s8 = sand.u32 1, %s468_s18  }
 0x11e   : > { %s317_s11 = scalar_lea.sflag [#allocation3], %s316_s8 }
 0x11f   : > { %p380_p7 = pnand %p383_p4, %p554_p6 }
 0x121   : > { %p381_p8 = pneg %p380_p7 }
 0x123   : > { %463 = dma.done.wait (%p381_p8), %s317_s11, 128  }
 0x124   : > { %465 = vsyncadd (%p381_p8), %s317_s11, 4294967168  ;;  %p15_p9 = scmp.ge.s32.totalorder %s537_s24, 4   ;;  %s631_s18 = smov %s472_s19 }
 0x125   : > { %s632_s19 = smov %s476_s20  ;;  %s633_s20 = smov %s548_s27 }
 0x126   : > { %s634_s21 = smov %s537_s24  ;;  %17 = sbr.rel (!%p15_p9) target bundleno = 3 (0x3), region = 75 }
 0x12b   :  { %323 = vsyncpa [#allocation3], 1 }
 0x12c   :  { %325 = vsyncpa [#allocation3 + $0x1], 1 }

</bundles_post_ra>
